<compile_context>
chip_gen: v7x
topology: tpu7x:2x2x1
jax: 0.10.0
libtpu: 0.0.40
codegen_flags: <defaults>
</compile_context>

<pallas_src>
import functools
import math

import jax
import jax.numpy as jnp
from jax.experimental import pallas as pl
from jax.experimental.pallas import tpu as pltpu


def _round_up(x, m):
    return (x + m - 1) // m * m


def _leaky_relu(x, slope=0.3):
    return jnp.where(x >= 0, x, slope * x)


def concat_linear_kernel(x_ref, w1_ref, b1_ref, g_ref, be_ref, w2_ref, b2_ref,
                         o_ref, *, d_real, mxu_dtype):
    """One row tile: linear1 + residual + LayerNorm + leaky + linear2 + leaky."""
    src = x_ref[...].astype(jnp.float32)                       # (TM, Dp), f32

    # linear1 (+ bias) + residual; dropout is identity at inference.
    # TODO(synk): training-mode dropout (random mask) not implemented.
    h = jnp.dot(src.astype(mxu_dtype), w1_ref[...],
                preferred_element_type=jnp.float32) + b1_ref[...]
    r = src + h                                                # padded lanes stay 0

    # LayerNorm over the d_real true features (eps = 1e-5). Padded lanes of r
    # are exactly zero (zero-padded inputs / weight columns / biases), so the
    # full-lane sum equals the real-lane sum; only the centered values need a
    # mask when Dp > d_real.
    inv_d = 1.0 / d_real
    mean = jnp.sum(r, axis=-1, keepdims=True) * inv_d
    cen = r - mean
    if d_real != r.shape[-1]:
        lane = jax.lax.broadcasted_iota(jnp.int32, r.shape, dimension=1)
        cen = jnp.where(lane < d_real, cen, 0.0)
    var = jnp.sum(cen * cen, axis=-1, keepdims=True) * inv_d
    xn = cen * jax.lax.rsqrt(var + 1e-5) * g_ref[...] + be_ref[...]

    # act1 -> linear2 -> act2
    a = _leaky_relu(xn)
    h2 = jnp.dot(a.astype(mxu_dtype), w2_ref[...],
                 preferred_element_type=jnp.float32) + b2_ref[...]
    o_ref[...] = _leaky_relu(h2).astype(o_ref.dtype)


@functools.partial(jax.jit, static_argnames=("tm", "mxu_dtype"))
def concat_linear(x1, x2, params, *, tm=256, mxu_dtype=jnp.bfloat16):
    """x1: (..., in1), x2: (..., in2).  Returns (..., out) with out = in1+in2."""
    w1, b1, gamma, beta, w2, b2 = params
    in1, in2 = x1.shape[-1], x2.shape[-1]
    d = in1 + in2
    assert w1.shape == (d, d) and w2.shape == (d, d)

    lead = x1.shape[:-1]
    n = math.prod(lead) if lead else 1

    # Lane-dense feature dim, sublane-aligned row tile, padded row count.
    d_pad = _round_up(d, 128)
    tm8 = max(8, (tm // 8) * 8)
    tm_eff = min(tm8, _round_up(n, 8))
    n_pad = _round_up(n, tm_eff)

    # One concat + zero-pad outside the hot loop.
    src = jnp.concatenate([x1.reshape(n, in1), x2.reshape(n, in2)], axis=-1)
    src = jnp.pad(src, ((0, n_pad - n), (0, d_pad - d)))

    dp = d_pad - d
    w1p = jnp.pad(w1, ((0, dp), (0, dp))).astype(mxu_dtype)
    w2p = jnp.pad(w2, ((0, dp), (0, dp))).astype(mxu_dtype)
    b1p = jnp.pad(b1, (0, dp)).reshape(1, d_pad).astype(jnp.float32)
    gp = jnp.pad(gamma, (0, dp)).reshape(1, d_pad).astype(jnp.float32)
    bep = jnp.pad(beta, (0, dp)).reshape(1, d_pad).astype(jnp.float32)
    b2p = jnp.pad(b2, (0, dp)).reshape(1, d_pad).astype(jnp.float32)

    grid = (n_pad // tm_eff,)
    row_spec = pl.BlockSpec((tm_eff, d_pad), lambda i: (i, 0))
    w_spec = pl.BlockSpec((d_pad, d_pad), lambda i: (0, 0))   # grid-invariant
    v_spec = pl.BlockSpec((1, d_pad), lambda i: (0, 0))       # grid-invariant

    # VMEM budget: double-buffered I/O tiles + resident weights + f32 temps.
    # Capped at 64 MiB so the same setting is valid on v7x (64 MiB physical).
    wb = jnp.dtype(mxu_dtype).itemsize
    xb = src.dtype.itemsize
    needed = (2 * d_pad * d_pad * wb * 2          # w1, w2 (double-buffered)
              + 4 * d_pad * 4 * 2                 # biases / gamma / beta
              + tm_eff * d_pad * xb * 2           # input tile
              + tm_eff * d_pad * 4 * 2            # output tile
              + 6 * tm_eff * d_pad * 4)           # f32 intermediates
    vmem_limit = int(min(max(2 * needed, 32 * 1024 * 1024), 64 * 1024 * 1024))

    cost = pl.CostEstimate(
        flops=4 * n_pad * d_pad * d_pad,          # two (tm,Dp)x(Dp,Dp) matmuls
        transcendentals=n_pad,                    # one rsqrt per row
        bytes_accessed=n_pad * d_pad * (xb + 4) + 2 * d_pad * d_pad * wb,
    )

    kernel = functools.partial(concat_linear_kernel, d_real=d,
                               mxu_dtype=mxu_dtype)

    out = pl.pallas_call(
        kernel,
        out_shape=jax.ShapeDtypeStruct((n_pad, d_pad), x1.dtype),
        grid_spec=pltpu.PrefetchScalarGridSpec(
            num_scalar_prefetch=0,
            grid=grid,
            in_specs=[row_spec,            # src
                      w_spec, v_spec,      # w1, b1
                      v_spec, v_spec,      # gamma, beta
                      w_spec, v_spec],     # w2, b2
            out_specs=pl.BlockSpec((tm_eff, d_pad), lambda i: (i, 0)),
        ),
        compiler_params=pltpu.CompilerParams(
            dimension_semantics=("parallel",),
            vmem_limit_bytes=vmem_limit),
        cost_estimate=cost,
    )(src, w1p, b1p, gp, bep, w2p, b2p)

    return out[:n, :d].reshape(*lead, d)


def init_params(key, in1, in2):
    d = in1 + in2  # residual `src + out` forces out == in1 + in2
    k1, k2, k3, k4 = jax.random.split(key, 4)
    scale1 = 1.0 / jnp.sqrt(jnp.float32(d))
    w1 = jax.random.uniform(k1, (d, d), jnp.float32, -scale1, scale1)
    b1 = jax.random.uniform(k2, (d,), jnp.float32, -scale1, scale1)
    gamma = jnp.ones((d,), jnp.float32)
    beta = jnp.zeros((d,), jnp.float32)
    w2 = jax.random.uniform(k3, (d, d), jnp.float32, -scale1, scale1)
    b2 = jax.random.uniform(k4, (d,), jnp.float32, -scale1, scale1)
    return (w1, b1, gamma, beta, w2, b2)


def reference(x1, x2, params):
    w1, b1, gamma, beta, w2, b2 = params
    src = jnp.concatenate([x1, x2], axis=-1)
    out = src @ w1 + b1
    out = src + out
    mean = jnp.mean(out, axis=-1, keepdims=True)
    var = jnp.mean((out - mean) ** 2, axis=-1, keepdims=True)
    out = (out - mean) * jax.lax.rsqrt(var + 1e-5) * gamma + beta
    out = jnp.where(out >= 0, out, 0.3 * out)
    out = out @ w2 + b2
    return jnp.where(out >= 0, out, 0.3 * out)


if __name__ == "__main__":
    key = jax.random.PRNGKey(0)
    k_x1, k_x2, k_p = jax.random.split(key, 3)

    batch, seq = 2, 8
    in1, in2 = 16, 16          # -> out = 32 (required by the residual add)

    x1 = jax.random.normal(k_x1, (batch, seq, in1), jnp.float32)
    x2 = jax.random.normal(k_x2, (batch, seq, in2), jnp.float32)
    params = init_params(k_p, in1, in2)

    y_ref = reference(x1, x2, params)

    # f32 MXU path: tight check against the JAX reference.
    y32 = jax.block_until_ready(concat_linear(x1, x2, params,
                                              mxu_dtype=jnp.float32))
    assert y32.shape == (batch, seq, in1 + in2)
    assert jnp.allclose(y32, y_ref, rtol=1e-4, atol=1e-4), "f32 path mismatch"

    # bf16-operand MXU path (default / fast): bf16 rounding bounds the error.
    ybf = jax.block_until_ready(concat_linear(x1, x2, params))
    assert ybf.shape == (batch, seq, in1 + in2)
    assert jnp.allclose(ybf, y_ref, rtol=5e-2, atol=5e-2), "bf16 path mismatch"

    print("KERNEL_OK")
</pallas_src>

<mosaic_0001>
module attributes {stable_mosaic.version = 11 : i64} {
  func.func @concat_linear_kernel(%arg0: i32, %arg1: memref<16x128xf32, #tpu.memory_space<vmem>>, %arg2: memref<128x128xf32, #tpu.memory_space<vmem>>, %arg3: memref<1x128xf32, #tpu.memory_space<vmem>>, %arg4: memref<1x128xf32, #tpu.memory_space<vmem>>, %arg5: memref<1x128xf32, #tpu.memory_space<vmem>>, %arg6: memref<128x128xf32, #tpu.memory_space<vmem>>, %arg7: memref<1x128xf32, #tpu.memory_space<vmem>>, %arg8: memref<16x128xf32, #tpu.memory_space<vmem>>) attributes {dimension_semantics = [#tpu.dimension_semantics<parallel>], iteration_bounds = array<i64: 1>, scalar_prefetch = 0 : i64, scratch_operands = 0 : i64, tpu.core_type = #tpu.core_type<tc>, window_params = [{transform_indices = @transform_0, window_bounds = array<i64: 16, 128>}, {pipeline_mode = #tpu.pipeline_mode<synchronous>, transform_indices = @transform_1, window_bounds = array<i64: 128, 128>}, {pipeline_mode = #tpu.pipeline_mode<synchronous>, transform_indices = @transform_2, window_bounds = array<i64: 1, 128>}, {pipeline_mode = #tpu.pipeline_mode<synchronous>, transform_indices = @transform_3, window_bounds = array<i64: 1, 128>}, {pipeline_mode = #tpu.pipeline_mode<synchronous>, transform_indices = @transform_4, window_bounds = array<i64: 1, 128>}, {pipeline_mode = #tpu.pipeline_mode<synchronous>, transform_indices = @transform_5, window_bounds = array<i64: 128, 128>}, {pipeline_mode = #tpu.pipeline_mode<synchronous>, transform_indices = @transform_6, window_bounds = array<i64: 1, 128>}, {transform_indices = @transform_7, window_bounds = array<i64: 16, 128>}]} {
    %c0 = arith.constant 0 : index
    %c0_0 = arith.constant 0 : index
    %0 = vector.load %arg1[%c0, %c0_0] : memref<16x128xf32, #tpu.memory_space<vmem>>, vector<16x128xf32>
    %c0_1 = arith.constant 0 : index
    %c0_2 = arith.constant 0 : index
    %1 = vector.load %arg2[%c0_1, %c0_2] : memref<128x128xf32, #tpu.memory_space<vmem>>, vector<128x128xf32>
    %cst = arith.constant dense<0.000000e+00> : vector<16x128xf32>
    %2 = tpu.matmul %0, %1, %cst {dimension_numbers = #tpu.dot_dimension_numbers<[1], [0], [0], [1], [0, 0, 1, 1], [], []>} : vector<16x128xf32>, vector<128x128xf32>, vector<16x128xf32> -> vector<16x128xf32>
    %c0_3 = arith.constant 0 : index
    %c0_4 = arith.constant 0 : index
    %3 = vector.load %arg3[%c0_3, %c0_4] : memref<1x128xf32, #tpu.memory_space<vmem>>, vector<1x128xf32>
    %4 = vector.broadcast %3 : vector<1x128xf32> to vector<16x128xf32>
    %5 = arith.addf %2, %4 : vector<16x128xf32>
    %6 = arith.addf %0, %5 : vector<16x128xf32>
    %cst_5 = arith.constant dense<0.000000e+00> : vector<16xf32>
    %7 = vector.multi_reduction <add>, %6, %cst_5 [1] : vector<16x128xf32> to vector<16xf32>
    %8 = vector.shape_cast %7 : vector<16xf32> to vector<16x1xf32>
    %cst_6 = arith.constant 3.125000e-02 : f32
    %9 = vector.broadcast %cst_6 : f32 to vector<16x1xf32>
    %10 = arith.mulf %8, %9 : vector<16x1xf32>
    %11 = vector.broadcast %10 : vector<16x1xf32> to vector<16x128xf32>
    %12 = arith.subf %6, %11 : vector<16x128xf32>
    %13 = tpu.iota {dimensions = array<i32: 1>} : vector<16x128xi32>
    %c32_i32 = arith.constant 32 : i32
    %14 = vector.broadcast %c32_i32 : i32 to vector<16x128xi32>
    %15 = arith.cmpi slt, %13, %14 : vector<16x128xi32>
    %cst_7 = arith.constant 0.000000e+00 : f32
    %16 = vector.broadcast %cst_7 : f32 to vector<16x128xf32>
    %17 = arith.select %15, %12, %16 : vector<16x128xi1>, vector<16x128xf32>
    %18 = arith.mulf %17, %17 : vector<16x128xf32>
    %cst_8 = arith.constant dense<0.000000e+00> : vector<16xf32>
    %19 = vector.multi_reduction <add>, %18, %cst_8 [1] : vector<16x128xf32> to vector<16xf32>
    %20 = vector.shape_cast %19 : vector<16xf32> to vector<16x1xf32>
    %cst_9 = arith.constant 3.125000e-02 : f32
    %21 = vector.broadcast %cst_9 : f32 to vector<16x1xf32>
    %22 = arith.mulf %20, %21 : vector<16x1xf32>
    %cst_10 = arith.constant 9.99999974E-6 : f32
    %23 = vector.broadcast %cst_10 : f32 to vector<16x1xf32>
    %24 = arith.addf %22, %23 : vector<16x1xf32>
    %25 = math.rsqrt %24 : vector<16x1xf32>
    %26 = vector.broadcast %25 : vector<16x1xf32> to vector<16x128xf32>
    %27 = arith.mulf %17, %26 : vector<16x128xf32>
    %c0_11 = arith.constant 0 : index
    %c0_12 = arith.constant 0 : index
    %28 = vector.load %arg4[%c0_11, %c0_12] : memref<1x128xf32, #tpu.memory_space<vmem>>, vector<1x128xf32>
    %29 = vector.broadcast %28 : vector<1x128xf32> to vector<16x128xf32>
    %30 = arith.mulf %27, %29 : vector<16x128xf32>
    %c0_13 = arith.constant 0 : index
    %c0_14 = arith.constant 0 : index
    %31 = vector.load %arg5[%c0_13, %c0_14] : memref<1x128xf32, #tpu.memory_space<vmem>>, vector<1x128xf32>
    %32 = vector.broadcast %31 : vector<1x128xf32> to vector<16x128xf32>
    %33 = arith.addf %30, %32 : vector<16x128xf32>
    %cst_15 = arith.constant 0.000000e+00 : f32
    %34 = vector.broadcast %cst_15 : f32 to vector<16x128xf32>
    %35 = arith.cmpf oge, %33, %34 : vector<16x128xf32>
    %cst_16 = arith.constant 3.000000e-01 : f32
    %36 = vector.broadcast %cst_16 : f32 to vector<16x128xf32>
    %37 = arith.mulf %36, %33 : vector<16x128xf32>
    %38 = arith.select %35, %33, %37 : vector<16x128xi1>, vector<16x128xf32>
    %c0_17 = arith.constant 0 : index
    %c0_18 = arith.constant 0 : index
    %39 = vector.load %arg6[%c0_17, %c0_18] : memref<128x128xf32, #tpu.memory_space<vmem>>, vector<128x128xf32>
    %cst_19 = arith.constant dense<0.000000e+00> : vector<16x128xf32>
    %40 = tpu.matmul %38, %39, %cst_19 {dimension_numbers = #tpu.dot_dimension_numbers<[1], [0], [0], [1], [0, 0, 1, 1], [], []>} : vector<16x128xf32>, vector<128x128xf32>, vector<16x128xf32> -> vector<16x128xf32>
    %c0_20 = arith.constant 0 : index
    %c0_21 = arith.constant 0 : index
    %41 = vector.load %arg7[%c0_20, %c0_21] : memref<1x128xf32, #tpu.memory_space<vmem>>, vector<1x128xf32>
    %42 = vector.broadcast %41 : vector<1x128xf32> to vector<16x128xf32>
    %43 = arith.addf %40, %42 : vector<16x128xf32>
    %cst_22 = arith.constant 0.000000e+00 : f32
    %44 = vector.broadcast %cst_22 : f32 to vector<16x128xf32>
    %45 = arith.cmpf oge, %43, %44 : vector<16x128xf32>
    %cst_23 = arith.constant 3.000000e-01 : f32
    %46 = vector.broadcast %cst_23 : f32 to vector<16x128xf32>
    %47 = arith.mulf %46, %43 : vector<16x128xf32>
    %48 = arith.select %45, %43, %47 : vector<16x128xi1>, vector<16x128xf32>
    %c0_24 = arith.constant 0 : index
    %c0_25 = arith.constant 0 : index
    %49 = vector.load %arg8[%c0_24, %c0_25] : memref<16x128xf32, #tpu.memory_space<vmem>>, vector<16x128xf32>
    tpu.vector_store %arg8[%c0_24, %c0_25], %48 {strides = array<i32>} : memref<16x128xf32, #tpu.memory_space<vmem>>, vector<16x128xf32>,
    return
  }
  func.func @transform_0(%arg0: i32) -> (i32, i32) {
    %c0_i32 = arith.constant 0 : i32
    %c0_i32_0 = arith.constant 0 : i32
    return %arg0, %c0_i32 : i32, i32
  }
  func.func @transform_1(%arg0: i32) -> (i32, i32) {
    %c0_i32 = arith.constant 0 : i32
    %c0_i32_0 = arith.constant 0 : i32
    %c0_i32_1 = arith.constant 0 : i32
    return %c0_i32, %c0_i32_0 : i32, i32
  }
  func.func @transform_2(%arg0: i32) -> (i32, i32) {
    %c0_i32 = arith.constant 0 : i32
    %c0_i32_0 = arith.constant 0 : i32
    %c0_i32_1 = arith.constant 0 : i32
    return %c0_i32, %c0_i32_0 : i32, i32
  }
  func.func @transform_3(%arg0: i32) -> (i32, i32) {
    %c0_i32 = arith.constant 0 : i32
    %c0_i32_0 = arith.constant 0 : i32
    %c0_i32_1 = arith.constant 0 : i32
    return %c0_i32, %c0_i32_0 : i32, i32
  }
  func.func @transform_4(%arg0: i32) -> (i32, i32) {
    %c0_i32 = arith.constant 0 : i32
    %c0_i32_0 = arith.constant 0 : i32
    %c0_i32_1 = arith.constant 0 : i32
    return %c0_i32, %c0_i32_0 : i32, i32
  }
  func.func @transform_5(%arg0: i32) -> (i32, i32) {
    %c0_i32 = arith.constant 0 : i32
    %c0_i32_0 = arith.constant 0 : i32
    %c0_i32_1 = arith.constant 0 : i32
    return %c0_i32, %c0_i32_0 : i32, i32
  }
  func.func @transform_6(%arg0: i32) -> (i32, i32) {
    %c0_i32 = arith.constant 0 : i32
    %c0_i32_0 = arith.constant 0 : i32
    %c0_i32_1 = arith.constant 0 : i32
    return %c0_i32, %c0_i32_0 : i32, i32
  }
  func.func @transform_7(%arg0: i32) -> (i32, i32) {
    %c0_i32 = arith.constant 0 : i32
    %c0_i32_0 = arith.constant 0 : i32
    return %arg0, %c0_i32 : i32, i32
  }
}

</mosaic_0001>

<bundles_post_ra>
// kernel: concat_linear.1
= control target key start
LH: loop header
LB: loop body
LE: loop exit
PB: predicated region body
PF: predicated region fallthrough
CT: control target
= control target key end

     0   :  { %v136_v36 = vlaneseq  ;;  %s627_s1 = inlined_call_operand.vmem [shape: f32[128,128], index: 1, kind: input, shape index: {}]   ;;  %s628_s0 = inlined_call_operand.vmem [shape: f32[16,128], index: 0, kind: input, shape index: {}]   ;;  %s629_s2 = inlined_call_operand.vmem [shape: f32[1,128], index: 2, kind: input, shape index: {}]   ;;  %s630_s5 = inlined_call_operand.vmem [shape: f32[128,128], index: 5, kind: input, shape index: {}]   ;;  %s631_s3 = inlined_call_operand.vmem [shape: f32[1,128], index: 3, kind: input, shape index: {}]   ;;  %s632_s4 = inlined_call_operand.vmem [shape: f32[1,128], index: 4, kind: input, shape index: {}]   ;;  %s633_s6 = inlined_call_operand.vmem [shape: f32[1,128], index: 6, kind: input, shape index: {}]   ;;  %s634_s7 = inlined_call_operand.vmem [shape: f32[16,128], index: 7, kind: output, shape index: {}]  }
   0x1   :  { %v28_v0 = vld [vmem:[%s627_s1] sm:$0xff]  ;;  %v29_v1 = vld [vmem:[%s627_s1 + $0x8] sm:$0xff]  ;;  %v30_v2 = vld [vmem:[%s627_s1 + $0x10] sm:$0xff] }
   0x2   :  { %v399_v3 = vpack.c.bf16 %v29_v1, %v28_v0  ;;  %v31_v4 = vld [vmem:[%s627_s1 + $0x18] sm:$0xff]  ;;  %v32_v6 = vld [vmem:[%s627_s1 + $0x20] sm:$0xff]  ;;  %v33_v7 = vld [vmem:[%s627_s1 + $0x28] sm:$0xff]  ;;  %v137_v37 = vand.u32 127, %v136_v36 }
   0x3   :  { %v403_v5 = vpack.c.bf16 %v31_v4, %v30_v2  ;;  %v407_v8 = vpack.c.bf16 %v33_v7, %v32_v6  ;;  %v26_v9 = vld [vmem:[%s628_s0] sm:$0xff]  ;;  %v34_v10 = vld [vmem:[%s627_s1 + $0x30] sm:$0xff]  ;;  %v35_v11 = vld [vmem:[%s627_s1 + $0x38] sm:$0xff] }
   0x4   :  { %400 = vmatprep.subr.bf16.mxu0 %v399_v3  ;;  %361 = vmatprep.mubr.f32.mxu0 %v26_v9  ;;  %v411_v12 = vpack.c.bf16 %v35_v11, %v34_v10  ;;  %v36_v13 = vld [vmem:[%s627_s1 + $0x40] sm:$0xff]  ;;  %v37_v14 = vld [vmem:[%s627_s1 + $0x48] sm:$0xff]  ;;  %v38_v16 = vld [vmem:[%s627_s1 + $0x50] sm:$0xff]  ;;  %vm138_vm0 = vcmp.lt.s32.totalorder %v137_v37, 32 }
   0x5   :  { %402 = vmatpush3.bf16.msra.mxu0 %v399_v3  ;;  %v415_v15 = vpack.c.bf16 %v37_v14, %v36_v13  ;;  %v39_v17 = vld [vmem:[%s627_s1 + $0x58] sm:$0xff]  ;;  %v40_v19 = vld [vmem:[%s627_s1 + $0x60] sm:$0xff]  ;;  %v41_v20 = vld [vmem:[%s627_s1 + $0x68] sm:$0xff] }
   0x6   :  { %404 = vmatprep.subr.bf16.mxu0 %v403_v5  ;;  %v419_v18 = vpack.c.bf16 %v39_v17, %v38_v16  ;;  %v423_v21 = vpack.c.bf16 %v41_v20, %v40_v19  ;;  %v42_v22 = vld [vmem:[%s627_s1 + $0x70] sm:$0xff]  ;;  %v43_v23 = vld [vmem:[%s627_s1 + $0x78] sm:$0xff]  ;;  %v27_v25 = vld [vmem:[%s628_s0 + $0x8] sm:$0xff] }
   0x7   :  { %v427_v24 = vpack.c.bf16 %v43_v23, %v42_v22  ;;  %v289_v26 = vld [vmem:[%s629_s2] ss:$0 sm:$0xff]  ;;  %v180_v34 = vld [vmem:[%s630_s5 + $0x8] sm:$0xff]  ;;  %v181_v48 = vld [vmem:[%s630_s5 + $0x10] sm:$0xff] }
   0x8   :  { %v179_v33 = vld [vmem:[%s630_s5] sm:$0xff]  ;;  %v182_v49 = vld [vmem:[%s630_s5 + $0x18] sm:$0xff]  ;;  %v184_v52 = vld [vmem:[%s630_s5 + $0x28] sm:$0xff] }
   0x9   :  { %406 = vmatpush3.bf16.msra.mxu0 %v403_v5  ;;  %v431_v35 = vpack.c.bf16 %v180_v34, %v179_v33  ;;  %v435_v50 = vpack.c.bf16 %v182_v49, %v181_v48  ;;  %v183_v51 = vld [vmem:[%s630_s5 + $0x20] sm:$0xff]  ;;  %v185_v54 = vld [vmem:[%s630_s5 + $0x30] sm:$0xff]  ;;  %v186_v55 = vld [vmem:[%s630_s5 + $0x38] sm:$0xff] }
   0xa   :  { %408 = vmatprep.subr.bf16.mxu0 %v407_v8  ;;  %v439_v53 = vpack.c.bf16 %v184_v52, %v183_v51  ;;  %v443_v56 = vpack.c.bf16 %v186_v55, %v185_v54  ;;  %v187_v57 = vld [vmem:[%s630_s5 + $0x40] sm:$0xff]  ;;  %v188_v58 = vld [vmem:[%s630_s5 + $0x48] sm:$0xff]  ;;  %v189_v59 = vld [vmem:[%s630_s5 + $0x50] sm:$0xff] }
   0xb   :  { %432 = vmatprep.subr.bf16.mxu1 %v431_v35  ;;  %v447_v60 = vpack.c.bf16 %v188_v58, %v187_v57  ;;  %v190_v61 = vld [vmem:[%s630_s5 + $0x58] sm:$0xff]  ;;  %v191_v63 = vld [vmem:[%s630_s5 + $0x60] sm:$0xff]  ;;  %v192_v0 = vld [vmem:[%s630_s5 + $0x68] sm:$0xff] }
   0xc   :  { %434 = vmatpush3.bf16.msra.mxu1 %v431_v35  ;;  %v451_v62 = vpack.c.bf16 %v190_v61, %v189_v59  ;;  %v455_v1 = vpack.c.bf16 %v192_v0, %v191_v63  ;;  %v193_v2 = vld [vmem:[%s630_s5 + $0x70] sm:$0xff]  ;;  %v194_v3 = vld [vmem:[%s630_s5 + $0x78] sm:$0xff]  ;;  %v291_v14 = vld [vmem:[%s632_s4] ss:$0 sm:$0xff] }
   0xd   :  { %410 = vmatpush3.bf16.msra.mxu0 %v407_v8  ;;  %436 = vmatprep.subr.bf16.mxu1 %v435_v50  ;;  %v459_v4 = vpack.c.bf16 %v194_v3, %v193_v2 }
   0xe   :  { %412 = vmatprep.subr.bf16.mxu0 %v411_v12 }
  0x10   :  { %438 = vmatpush3.bf16.msra.mxu1 %v435_v50 }
  0x11   :  { %414 = vmatpush3.bf16.msra.mxu0 %v411_v12  ;;  %440 = vmatprep.subr.bf16.mxu1 %v439_v53  ;;  %v290_v12 = vld [vmem:[%s631_s3] ss:$0 sm:$0xff] }
  0x12   :  { %416 = vmatprep.subr.bf16.mxu0 %v415_v15 }
  0x14   :  { %442 = vmatpush3.bf16.msra.mxu1 %v439_v53 }
  0x15   :  { %418 = vmatpush3.bf16.msra.mxu0 %v415_v15  ;;  %444 = vmatprep.subr.bf16.mxu1 %v443_v56 }
  0x16   :  { %420 = vmatprep.subr.bf16.mxu0 %v419_v18 }
  0x18   :  { %446 = vmatpush3.bf16.msra.mxu1 %v443_v56 }
  0x19   :  { %422 = vmatpush3.bf16.msra.mxu0 %v419_v18  ;;  %448 = vmatprep.subr.bf16.mxu1 %v447_v60 }
  0x1a   :  { %424 = vmatprep.subr.bf16.mxu0 %v423_v21 }
  0x1c   :  { %450 = vmatpush3.bf16.msra.mxu1 %v447_v60 }
  0x1d   :  { %426 = vmatpush3.bf16.msra.mxu0 %v423_v21  ;;  %452 = vmatprep.subr.bf16.mxu1 %v451_v62 }
  0x1e   :  { %428 = vmatprep.subr.bf16.mxu0 %v427_v24 }
  0x20   :  { %454 = vmatpush3.bf16.msra.mxu1 %v451_v62 }
  0x21   :  { %430 = vmatpush3.bf16.msra.mxu0 %v427_v24  ;;  %456 = vmatprep.subr.bf16.mxu1 %v455_v1 }
  0x24   :  { %362 = vmatmul.mubr.f32.vlgmr.msra.gmra.mrb[0].mxu0 %v27_v25  ;;  %458 = vmatpush3.bf16.msra.mxu1 %v455_v1 }
  0x25   :  { %460 = vmatprep.subr.bf16.mxu1 %v459_v4 }
  0x28   :  { %462 = vmatpush3.bf16.msra.mxu1 %v459_v4 }
  0xf7   :  { %v363_v27 = vpop.f32.mrb[0].mxu0 }
  0xf8   :  { %v117_v28 = vpop.f32.mrb[1].mxu0  ;;  %v123_v30 = vadd.f32 %v363_v27, %v289_v26 }
  0xf9   :  { %v118_v29 = vadd.f32 %v289_v26, %v117_v28 }
  0xfa   :  { %v127_v32 = vadd.f32 %v123_v30, %v27_v25  ;;  %v292_v25 = vld [vmem:[%s633_s6] ss:$0 sm:$0xff] }
  0xfb   :  { %v126_v31 = vadd.f32 %v118_v29, %v26_v9 }
  0xfd   :  { %128 = vadd.xlane.f32.xlu0 %v126_v31 }
 0x101   :  { %130 = vadd.xlane.f32.xlu0 %v127_v32 }
 0x18a   :  { %v129_v38 = vpop.xlane.xlu0 %128 }
 0x18b   :  { %v132_v39 = vmul.f32 0.03125, %v129_v38 }
 0x18d   :  { %v134_v40 = vsub.f32 %v126_v31, %v132_v39 }
 0x18e   :  { %v131_v41 = vpop.xlane.xlu0 %130 }
 0x18f   :  { %v133_v42 = vmul.f32 0.03125, %v131_v41  ;;  %v139_v43 = vsel %vm138_vm0, %v134_v40, 0.0 }
 0x190   :  { %v141_v44 = vmul.f32 %v139_v43, %v139_v43 }
 0x191   :  { %v135_v45 = vsub.f32 %v127_v32, %v133_v42 }
 0x192   :  { %143 = vadd.xlane.f32.xlu1 %v141_v44 }
 0x193   :  { %v140_v46 = vsel %vm138_vm0, %v135_v45, 0.0 }
 0x194   :  { %v142_v47 = vmul.f32 %v140_v46, %v140_v46 }
 0x196   :  { %145 = vadd.xlane.f32.xlu1 %v142_v47 }
 0x21f   :  { %v144_v5 = vpop.xlane.xlu1 %143 }
 0x220   :  { %v147_v6 = vmul.f32 0.03125, %v144_v5 }
 0x222   :  { %v149_v7 = vadd.f32 1e-05, %v147_v6 }
 0x223   :  { %v146_v8 = vpop.xlane.xlu1 %145 }
 0x224   :  { %463 = vrsqrt.f32 %v149_v7  ;;  %v148_v9 = vmul.f32 0.03125, %v146_v8 }
 0x226   :  { %v150_v10 = vadd.f32 1e-05, %v148_v9 }
 0x228   :  { %465 = vrsqrt.f32 %v150_v10 }
 0x22e   :  { %v464_v11 = vpop.eup %463 }
 0x22f   :  { %v153_v13 = vmul.f32 %v464_v11, %v139_v43 }
 0x231   :  { %v162_v15 = vmul.f32 %v290_v12, %v153_v13 }
 0x232   :  { %v466_v16 = vpop.eup %465 }
 0x233   :  { %v171_v17 = vadd.f32 %v291_v14, %v162_v15  ;;  %v154_v18 = vmul.f32 %v466_v16, %v140_v46 }
 0x235   :  { %vm173_vm1 = vcmp.ge.f32.partialorder %v171_v17, 0.0  ;;  %v175_v19 = vmul.f32 0.3, %v171_v17  ;;  %v163_v20 = vmul.f32 %v290_v12, %v154_v18 }
 0x237   :  { %v177_v21 = vsel %vm173_vm1, %v171_v17, %v175_v19  ;;  %v172_v22 = vadd.f32 %v291_v14, %v163_v20 }
 0x238   :  { %396 = vmatprep.mubr.f32.mxu1 %v177_v21 }
 0x239   :  { %vm174_vm2 = vcmp.ge.f32.partialorder %v172_v22, 0.0  ;;  %v176_v23 = vmul.f32 0.3, %v172_v22 }
 0x23b   :  { %v178_v24 = vsel %vm174_vm2, %v172_v22, %v176_v23 }
 0x23c   :  { %397 = vmatmul.mubr.f32.vlgmr.msra.gmra.mrb[0].mxu1 %v178_v24 }
 0x30f   :  { %v398_v26 = vpop.f32.mrb[0].mxu1 }
 0x310   :  { %v274_v27 = vadd.f32 %v398_v26, %v292_v25  ;;  %v268_v28 = vpop.f32.mrb[1].mxu1 }
 0x311   :  { %v269_v29 = vadd.f32 %v292_v25, %v268_v28 }
 0x312   :  { %vm278_vm3 = vcmp.ge.f32.partialorder %v274_v27, 0.0  ;;  %v280_v30 = vmul.f32 0.3, %v274_v27 }
 0x313   :  { %vm277_vm4 = vcmp.ge.f32.partialorder %v269_v29, 0.0  ;;  %v279_v31 = vmul.f32 0.3, %v269_v29 }
 0x314   :  { %v282_v32 = vsel %vm278_vm3, %v274_v27, %v280_v30 }
 0x315   :  { %284 = vst [vmem:[%s634_s7 + $0x8] sm:$0xff] %v282_v32  ;;  %v281_v33 = vsel %vm277_vm4, %v269_v29, %v279_v31 }
 0x316   :  { %283 = vst [vmem:[%s634_s7] sm:$0xff] %v281_v33 }

</bundles_post_ra>
